<compile_context>
chip_gen: v7x
topology: tpu7x:2x2x1
jax: 0.10.0
libtpu: 0.0.40
codegen_flags: <defaults>
</compile_context>

<pallas_src>
import jax
import jax.numpy as jnp
from jax import lax
from jax.experimental import pallas as pl
from jax.experimental.pallas import tpu as pltpu


H = 8        # target_space (LSTM hidden size)
H2 = 2 * H   # fused hidden-state width  [h_stu | h_con]
G = 8 * H    # fused gate width


# ---------------------------------------------------------------------------
# Kernel
# ---------------------------------------------------------------------------
def lstm_kc_kernel(x_ref, w_ih_ref, w_hh_ref, b_ref, out_ref, gx, hs):
    """Fused dual-LSTM forward.

    x_ref    : (n, S+C)  concatenated one-hot inputs
    w_ih_ref : (S+C, 8H) block-diagonal, gate cols [i_s,i_c,f_s,f_c,o_s,o_c,g_s,g_c]
    w_hh_ref : (2H, 8H)  block-diagonal, same column order
    b_ref    : (1, 8H)   combined b_ih + b_hh, same column order
    out_ref  : (n, 1)    per-timestep inner product of the two hidden streams
    gx, hs   : VMEM scratch (n, 8H) and (n, 2H)
    """
    n = x_ref.shape[0]

    # Prologue: input->hidden gate pre-activations for ALL timesteps in one
    # MXU pass (previously two separate matmuls).
    gx[...] = jnp.dot(x_ref[...], w_ih_ref[...],
                      preferred_element_type=jnp.float32) + b_ref[...]

    # Recurrent weights loaded once; small enough to stay in vregs.
    w_hh = w_hh_ref[...]                                   # (2H, 8H)

    def step(t, carry):
        h, c = carry                                       # (1, 2H) each, in vregs
        gates = gx[pl.ds(t, 1), :] + jnp.dot(
            h, w_hh, preferred_element_type=jnp.float32)   # (1, 8H)
        sig = jax.nn.sigmoid(gates[:, : 6 * H])            # [i_s,i_c,f_s,f_c,o_s,o_c]
        g = jnp.tanh(gates[:, 6 * H:])                     # [g_s, g_c]
        i = sig[:, 0:H2]
        f = sig[:, H2:2 * H2]
        o = sig[:, 2 * H2:3 * H2]
        c_new = f * c + i * g
        h_new = o * jnp.tanh(c_new)
        hs[pl.ds(t, 1), :] = h_new                         # stash for the epilogue
        return h_new, c_new

    zero = jnp.zeros((1, H2), jnp.float32)
    # Full unroll for short sequences; cap the factor for long ones.
    unroll = True if n <= 32 else 8
    lax.fori_loop(0, n, step, (zero, zero), unroll=unroll)

    # Epilogue (off the serial critical path): elementwise product of the two
    # hidden streams and the reduce over H, for all timesteps at once.
    h_all = hs[...]                                        # (n, 2H)
    prod = h_all[:, :H] * h_all[:, H:]                     # (n, H)
    out_ref[...] = jnp.sum(prod, axis=1, keepdims=True)    # (n, 1)


# ---------------------------------------------------------------------------
# Wrapper: weight packing + pallas_call
# ---------------------------------------------------------------------------
def _fuse_params(params):
    """Pack both LSTMs into block-diagonal fused matrices with gate-column
    order [i_s, i_c, f_s, f_c, o_s, o_c, g_s, g_c] (each block H wide)."""

    def split4(w):  # PyTorch gate order in the 4H axis: i, f, g, o
        return jnp.split(w, 4, axis=1)

    i_s, f_s, g_s, o_s = split4(params["w_ih_stu_t"])
    i_c, f_c, g_c, o_c = split4(params["w_ih_con_t"])
    S, C = i_s.shape[0], i_c.shape[0]
    zs = jnp.zeros((S, H), jnp.float32)
    zc = jnp.zeros((C, H), jnp.float32)
    w_ih = jnp.concatenate([
        jnp.concatenate([i_s, zs, f_s, zs, o_s, zs, g_s, zs], axis=1),
        jnp.concatenate([zc, i_c, zc, f_c, zc, o_c, zc, g_c], axis=1),
    ], axis=0)                                             # (S+C, 8H)

    hi_s, hf_s, hg_s, ho_s = split4(params["w_hh_stu_t"])
    hi_c, hf_c, hg_c, ho_c = split4(params["w_hh_con_t"])
    zh = jnp.zeros((H, H), jnp.float32)
    w_hh = jnp.concatenate([
        jnp.concatenate([hi_s, zh, hf_s, zh, ho_s, zh, hg_s, zh], axis=1),
        jnp.concatenate([zh, hi_c, zh, hf_c, zh, ho_c, zh, hg_c], axis=1),
    ], axis=0)                                             # (2H, 8H)

    bi_s, bf_s, bg_s, bo_s = split4(params["b_stu"])
    bi_c, bf_c, bg_c, bo_c = split4(params["b_con"])
    b = jnp.concatenate(
        [bi_s, bi_c, bf_s, bf_c, bo_s, bo_c, bg_s, bg_c], axis=1)  # (1, 8H)

    return w_ih, w_hh, b


def lstm_kc_forward(student_input, concept_input, params):
    n = student_input.shape[0]
    x = jnp.concatenate([student_input, concept_input], axis=1).astype(jnp.float32)
    w_ih, w_hh, b = _fuse_params(params)

    vmem = pl.BlockSpec(memory_space=pltpu.MemorySpace.VMEM)
    out = pl.pallas_call(
        lstm_kc_kernel,
        out_shape=jax.ShapeDtypeStruct((n, 1), jnp.float32),
        in_specs=[vmem, vmem, vmem, vmem],
        out_specs=vmem,
        scratch_shapes=[
            pltpu.VMEM((n, G), jnp.float32),    # gx: all-timestep gate pre-activations
            pltpu.VMEM((n, H2), jnp.float32),   # hs: per-timestep fused hidden states
        ],
    )(x, w_ih, w_hh, b)
    return out[:, 0]                                       # (n,)


# ---------------------------------------------------------------------------
# Pure-JAX reference (standard per-chain LSTM, PyTorch gate order) — used only
# to validate the fused/permuted weight packing.
# ---------------------------------------------------------------------------
def _lstm_ref(x, w_ih_t, w_hh_t, b):
    gx = x @ w_ih_t + b[0]                                 # (n, 4H)

    def step(carry, g_x):
        h, c = carry
        gates = g_x + h @ w_hh_t
        i = jax.nn.sigmoid(gates[0 * H:1 * H])
        f = jax.nn.sigmoid(gates[1 * H:2 * H])
        g = jnp.tanh(gates[2 * H:3 * H])
        o = jax.nn.sigmoid(gates[3 * H:4 * H])
        c = f * c + i * g
        h = o * jnp.tanh(c)
        return (h, c), h

    (_, _), hs = lax.scan(step, (jnp.zeros(H), jnp.zeros(H)), gx)
    return hs


def _forward_ref(student_input, concept_input, params):
    hs = _lstm_ref(student_input, params["w_ih_stu_t"],
                   params["w_hh_stu_t"], params["b_stu"])
    hc = _lstm_ref(concept_input, params["w_ih_con_t"],
                   params["w_hh_con_t"], params["b_con"])
    return jnp.sum(hs * hc, axis=1)


def _init_params(key, student_num, concept_num):
    """Deterministic init mimicking nn.LSTM's U(-1/sqrt(H), 1/sqrt(H))."""
    bound = 1.0 / jnp.sqrt(jnp.float32(H))
    ks = jax.random.split(key, 8)
    u = lambda k, shape: jax.random.uniform(k, shape, jnp.float32, -bound, bound)
    # PyTorch stores weight_ih as (4H, in); we keep it pre-transposed (in, 4H).
    # b = b_ih + b_hh, stored as a (1, 4H) row.
    return {
        "w_ih_stu_t": u(ks[0], (student_num, 4 * H)),
        "w_hh_stu_t": u(ks[1], (H, 4 * H)),
        "b_stu": u(ks[2], (1, 4 * H)) + u(ks[3], (1, 4 * H)),
        "w_ih_con_t": u(ks[4], (concept_num, 4 * H)),
        "w_hh_con_t": u(ks[5], (H, 4 * H)),
        "b_con": u(ks[6], (1, 4 * H)) + u(ks[7], (1, 4 * H)),
    }


if __name__ == "__main__":
    student_num, concept_num, n = 16, 12, 8

    key = jax.random.PRNGKey(0)
    k_params, k_stu, k_con = jax.random.split(key, 3)
    params = _init_params(k_params, student_num, concept_num)

    # One-hot rows, exactly like form_input would build.
    stu_idx = jax.random.randint(k_stu, (n,), 0, student_num)
    con_idx = jax.random.randint(k_con, (n,), 0, concept_num)
    student_input = jax.nn.one_hot(stu_idx, student_num, dtype=jnp.float32)
    concept_input = jax.nn.one_hot(con_idx, concept_num, dtype=jnp.float32)

    out = lstm_kc_forward(student_input, concept_input, params)
    out = jax.block_until_ready(out)

    ref = _forward_ref(student_input, concept_input, params)
    assert out.shape == (n,)
    assert jnp.allclose(out, ref, rtol=2e-2, atol=2e-2), (out, ref)

    print("KERNEL_OK")
</pallas_src>

<mosaic_0001>
module attributes {stable_mosaic.version = 11 : i64} {
  func.func @lstm_kc_kernel(%arg0: memref<8x28xf32, #tpu.memory_space<vmem>>, %arg1: memref<28x64xf32, #tpu.memory_space<vmem>>, %arg2: memref<16x64xf32, #tpu.memory_space<vmem>>, %arg3: memref<1x64xf32, #tpu.memory_space<vmem>>, %arg4: memref<8x1xf32, #tpu.memory_space<vmem>>, %arg5: memref<8x64xf32, #tpu.memory_space<vmem>>, %arg6: memref<8x16xf32, #tpu.memory_space<vmem>>) attributes {dimension_semantics = [], scalar_prefetch = 0 : i64, scratch_operands = 2 : i64, tpu.core_type = #tpu.core_type<tc>} {
    %c0 = arith.constant 0 : index
    %c0_0 = arith.constant 0 : index
    %0 = vector.load %arg0[%c0, %c0_0] : memref<8x28xf32, #tpu.memory_space<vmem>>, vector<8x28xf32>
    %c0_1 = arith.constant 0 : index
    %c0_2 = arith.constant 0 : index
    %1 = vector.load %arg1[%c0_1, %c0_2] : memref<28x64xf32, #tpu.memory_space<vmem>>, vector<28x64xf32>
    %cst = arith.constant dense<0.000000e+00> : vector<8x64xf32>
    %2 = tpu.matmul %0, %1, %cst {dimension_numbers = #tpu.dot_dimension_numbers<[1], [0], [0], [1], [0, 0, 1, 1], [], []>} : vector<8x28xf32>, vector<28x64xf32>, vector<8x64xf32> -> vector<8x64xf32>
    %c0_3 = arith.constant 0 : index
    %c0_4 = arith.constant 0 : index
    %3 = vector.load %arg3[%c0_3, %c0_4] : memref<1x64xf32, #tpu.memory_space<vmem>>, vector<1x64xf32>
    %4 = vector.broadcast %3 : vector<1x64xf32> to vector<8x64xf32>
    %5 = arith.addf %2, %4 : vector<8x64xf32>
    %c0_5 = arith.constant 0 : index
    %c0_6 = arith.constant 0 : index
    %6 = vector.load %arg5[%c0_5, %c0_6] : memref<8x64xf32, #tpu.memory_space<vmem>>, vector<8x64xf32>
    tpu.vector_store %arg5[%c0_5, %c0_6], %5 {strides = array<i32>} : memref<8x64xf32, #tpu.memory_space<vmem>>, vector<8x64xf32>,
    %c0_7 = arith.constant 0 : index
    %c0_8 = arith.constant 0 : index
    %7 = vector.load %arg2[%c0_7, %c0_8] : memref<16x64xf32, #tpu.memory_space<vmem>>, vector<16x64xf32>
    %cst_9 = arith.constant 0.000000e+00 : f32
    %8 = vector.broadcast %cst_9 : f32 to vector<1x16xf32>
    %c0_i32 = arith.constant 0 : i32
    %9 = arith.index_cast %c0_i32 : i32 to index
    %c0_10 = arith.constant 0 : index
    %10 = vector.load %arg5[%9, %c0_10] : memref<8x64xf32, #tpu.memory_space<vmem>>, vector<1x64xf32>
    %cst_11 = arith.constant dense<0.000000e+00> : vector<1x64xf32>
    %11 = tpu.matmul %8, %7, %cst_11 {dimension_numbers = #tpu.dot_dimension_numbers<[1], [0], [0], [1], [0, 0, 1, 1], [], []>} : vector<1x16xf32>, vector<16x64xf32>, vector<1x64xf32> -> vector<1x64xf32>
    %12 = arith.addf %10, %11 : vector<1x64xf32>
    %13 = vector.extract_strided_slice %12 {offsets = [0, 0], sizes = [1, 48], strides = [1, 1]} : vector<1x64xf32> to vector<1x48xf32>
    %14 = arith.negf %13 : vector<1x48xf32>
    %15 = math.exp %14 : vector<1x48xf32>
    %cst_12 = arith.constant 1.000000e+00 : f32
    %16 = vector.broadcast %cst_12 : f32 to vector<1x48xf32>
    %17 = arith.addf %16, %15 : vector<1x48xf32>
    %18 = arith.divf %16, %17 : vector<1x48xf32>
    %19 = vector.extract_strided_slice %12 {offsets = [0, 48], sizes = [1, 16], strides = [1, 1]} : vector<1x64xf32> to vector<1x16xf32>
    %20 = math.tanh %19 : vector<1x16xf32>
    %21 = vector.extract_strided_slice %18 {offsets = [0, 0], sizes = [1, 16], strides = [1, 1]} : vector<1x48xf32> to vector<1x16xf32>
    %22 = vector.extract_strided_slice %18 {offsets = [0, 16], sizes = [1, 16], strides = [1, 1]} : vector<1x48xf32> to vector<1x16xf32>
    %23 = vector.extract_strided_slice %18 {offsets = [0, 32], sizes = [1, 16], strides = [1, 1]} : vector<1x48xf32> to vector<1x16xf32>
    %24 = arith.mulf %22, %8 : vector<1x16xf32>
    %25 = arith.mulf %21, %20 : vector<1x16xf32>
    %26 = arith.addf %24, %25 : vector<1x16xf32>
    %27 = math.tanh %26 : vector<1x16xf32>
    %28 = arith.mulf %23, %27 : vector<1x16xf32>
    %29 = arith.index_cast %c0_i32 : i32 to index
    %c0_13 = arith.constant 0 : index
    %30 = vector.load %arg6[%29, %c0_13] : memref<8x16xf32, #tpu.memory_space<vmem>>, vector<1x16xf32>
    tpu.vector_store %arg6[%29, %c0_13], %28 {strides = array<i32>} : memref<8x16xf32, #tpu.memory_space<vmem>>, vector<1x16xf32>,
    %c1_i32 = arith.constant 1 : i32
    %31 = arith.index_cast %c1_i32 : i32 to index
    %c0_14 = arith.constant 0 : index
    %32 = vector.load %arg5[%31, %c0_14] : memref<8x64xf32, #tpu.memory_space<vmem>>, vector<1x64xf32>
    %cst_15 = arith.constant dense<0.000000e+00> : vector<1x64xf32>
    %33 = tpu.matmul %28, %7, %cst_15 {dimension_numbers = #tpu.dot_dimension_numbers<[1], [0], [0], [1], [0, 0, 1, 1], [], []>} : vector<1x16xf32>, vector<16x64xf32>, vector<1x64xf32> -> vector<1x64xf32>
    %34 = arith.addf %32, %33 : vector<1x64xf32>
    %35 = vector.extract_strided_slice %34 {offsets = [0, 0], sizes = [1, 48], strides = [1, 1]} : vector<1x64xf32> to vector<1x48xf32>
    %36 = arith.negf %35 : vector<1x48xf32>
    %37 = math.exp %36 : vector<1x48xf32>
    %cst_16 = arith.constant 1.000000e+00 : f32
    %38 = vector.broadcast %cst_16 : f32 to vector<1x48xf32>
    %39 = arith.addf %38, %37 : vector<1x48xf32>
    %40 = arith.divf %38, %39 : vector<1x48xf32>
    %41 = vector.extract_strided_slice %34 {offsets = [0, 48], sizes = [1, 16], strides = [1, 1]} : vector<1x64xf32> to vector<1x16xf32>
    %42 = math.tanh %41 : vector<1x16xf32>
    %43 = vector.extract_strided_slice %40 {offsets = [0, 0], sizes = [1, 16], strides = [1, 1]} : vector<1x48xf32> to vector<1x16xf32>
    %44 = vector.extract_strided_slice %40 {offsets = [0, 16], sizes = [1, 16], strides = [1, 1]} : vector<1x48xf32> to vector<1x16xf32>
    %45 = vector.extract_strided_slice %40 {offsets = [0, 32], sizes = [1, 16], strides = [1, 1]} : vector<1x48xf32> to vector<1x16xf32>
    %46 = arith.mulf %44, %26 : vector<1x16xf32>
    %47 = arith.mulf %43, %42 : vector<1x16xf32>
    %48 = arith.addf %46, %47 : vector<1x16xf32>
    %49 = math.tanh %48 : vector<1x16xf32>
    %50 = arith.mulf %45, %49 : vector<1x16xf32>
    %51 = arith.index_cast %c1_i32 : i32 to index
    %c0_17 = arith.constant 0 : index
    %52 = vector.load %arg6[%51, %c0_17] : memref<8x16xf32, #tpu.memory_space<vmem>>, vector<1x16xf32>
    tpu.vector_store %arg6[%51, %c0_17], %50 {strides = array<i32>} : memref<8x16xf32, #tpu.memory_space<vmem>>, vector<1x16xf32>,
    %c2_i32 = arith.constant 2 : i32
    %53 = arith.index_cast %c2_i32 : i32 to index
    %c0_18 = arith.constant 0 : index
    %54 = vector.load %arg5[%53, %c0_18] : memref<8x64xf32, #tpu.memory_space<vmem>>, vector<1x64xf32>
    %cst_19 = arith.constant dense<0.000000e+00> : vector<1x64xf32>
    %55 = tpu.matmul %50, %7, %cst_19 {dimension_numbers = #tpu.dot_dimension_numbers<[1], [0], [0], [1], [0, 0, 1, 1], [], []>} : vector<1x16xf32>, vector<16x64xf32>, vector<1x64xf32> -> vector<1x64xf32>
    %56 = arith.addf %54, %55 : vector<1x64xf32>
    %57 = vector.extract_strided_slice %56 {offsets = [0, 0], sizes = [1, 48], strides = [1, 1]} : vector<1x64xf32> to vector<1x48xf32>
    %58 = arith.negf %57 : vector<1x48xf32>
    %59 = math.exp %58 : vector<1x48xf32>
    %cst_20 = arith.constant 1.000000e+00 : f32
    %60 = vector.broadcast %cst_20 : f32 to vector<1x48xf32>
    %61 = arith.addf %60, %59 : vector<1x48xf32>
    %62 = arith.divf %60, %61 : vector<1x48xf32>
    %63 = vector.extract_strided_slice %56 {offsets = [0, 48], sizes = [1, 16], strides = [1, 1]} : vector<1x64xf32> to vector<1x16xf32>
    %64 = math.tanh %63 : vector<1x16xf32>
    %65 = vector.extract_strided_slice %62 {offsets = [0, 0], sizes = [1, 16], strides = [1, 1]} : vector<1x48xf32> to vector<1x16xf32>
    %66 = vector.extract_strided_slice %62 {offsets = [0, 16], sizes = [1, 16], strides = [1, 1]} : vector<1x48xf32> to vector<1x16xf32>
    %67 = vector.extract_strided_slice %62 {offsets = [0, 32], sizes = [1, 16], strides = [1, 1]} : vector<1x48xf32> to vector<1x16xf32>
    %68 = arith.mulf %66, %48 : vector<1x16xf32>
    %69 = arith.mulf %65, %64 : vector<1x16xf32>
    %70 = arith.addf %68, %69 : vector<1x16xf32>
    %71 = math.tanh %70 : vector<1x16xf32>
    %72 = arith.mulf %67, %71 : vector<1x16xf32>
    %73 = arith.index_cast %c2_i32 : i32 to index
    %c0_21 = arith.constant 0 : index
    %74 = vector.load %arg6[%73, %c0_21] : memref<8x16xf32, #tpu.memory_space<vmem>>, vector<1x16xf32>
    tpu.vector_store %arg6[%73, %c0_21], %72 {strides = array<i32>} : memref<8x16xf32, #tpu.memory_space<vmem>>, vector<1x16xf32>,
    %c3_i32 = arith.constant 3 : i32
    %75 = arith.index_cast %c3_i32 : i32 to index
    %c0_22 = arith.constant 0 : index
    %76 = vector.load %arg5[%75, %c0_22] : memref<8x64xf32, #tpu.memory_space<vmem>>, vector<1x64xf32>
    %cst_23 = arith.constant dense<0.000000e+00> : vector<1x64xf32>
    %77 = tpu.matmul %72, %7, %cst_23 {dimension_numbers = #tpu.dot_dimension_numbers<[1], [0], [0], [1], [0, 0, 1, 1], [], []>} : vector<1x16xf32>, vector<16x64xf32>, vector<1x64xf32> -> vector<1x64xf32>
    %78 = arith.addf %76, %77 : vector<1x64xf32>
    %79 = vector.extract_strided_slice %78 {offsets = [0, 0], sizes = [1, 48], strides = [1, 1]} : vector<1x64xf32> to vector<1x48xf32>
    %80 = arith.negf %79 : vector<1x48xf32>
    %81 = math.exp %80 : vector<1x48xf32>
    %cst_24 = arith.constant 1.000000e+00 : f32
    %82 = vector.broadcast %cst_24 : f32 to vector<1x48xf32>
    %83 = arith.addf %82, %81 : vector<1x48xf32>
    %84 = arith.divf %82, %83 : vector<1x48xf32>
    %85 = vector.extract_strided_slice %78 {offsets = [0, 48], sizes = [1, 16], strides = [1, 1]} : vector<1x64xf32> to vector<1x16xf32>
    %86 = math.tanh %85 : vector<1x16xf32>
    %87 = vector.extract_strided_slice %84 {offsets = [0, 0], sizes = [1, 16], strides = [1, 1]} : vector<1x48xf32> to vector<1x16xf32>
    %88 = vector.extract_strided_slice %84 {offsets = [0, 16], sizes = [1, 16], strides = [1, 1]} : vector<1x48xf32> to vector<1x16xf32>
    %89 = vector.extract_strided_slice %84 {offsets = [0, 32], sizes = [1, 16], strides = [1, 1]} : vector<1x48xf32> to vector<1x16xf32>
    %90 = arith.mulf %88, %70 : vector<1x16xf32>
    %91 = arith.mulf %87, %86 : vector<1x16xf32>
    %92 = arith.addf %90, %91 : vector<1x16xf32>
    %93 = math.tanh %92 : vector<1x16xf32>
    %94 = arith.mulf %89, %93 : vector<1x16xf32>
    %95 = arith.index_cast %c3_i32 : i32 to index
    %c0_25 = arith.constant 0 : index
    %96 = vector.load %arg6[%95, %c0_25] : memref<8x16xf32, #tpu.memory_space<vmem>>, vector<1x16xf32>
    tpu.vector_store %arg6[%95, %c0_25], %94 {strides = array<i32>} : memref<8x16xf32, #tpu.memory_space<vmem>>, vector<1x16xf32>,
    %c4_i32 = arith.constant 4 : i32
    %97 = arith.index_cast %c4_i32 : i32 to index
    %c0_26 = arith.constant 0 : index
    %98 = vector.load %arg5[%97, %c0_26] : memref<8x64xf32, #tpu.memory_space<vmem>>, vector<1x64xf32>
    %cst_27 = arith.constant dense<0.000000e+00> : vector<1x64xf32>
    %99 = tpu.matmul %94, %7, %cst_27 {dimension_numbers = #tpu.dot_dimension_numbers<[1], [0], [0], [1], [0, 0, 1, 1], [], []>} : vector<1x16xf32>, vector<16x64xf32>, vector<1x64xf32> -> vector<1x64xf32>
    %100 = arith.addf %98, %99 : vector<1x64xf32>
    %101 = vector.extract_strided_slice %100 {offsets = [0, 0], sizes = [1, 48], strides = [1, 1]} : vector<1x64xf32> to vector<1x48xf32>
    %102 = arith.negf %101 : vector<1x48xf32>
    %103 = math.exp %102 : vector<1x48xf32>
    %cst_28 = arith.constant 1.000000e+00 : f32
    %104 = vector.broadcast %cst_28 : f32 to vector<1x48xf32>
    %105 = arith.addf %104, %103 : vector<1x48xf32>
    %106 = arith.divf %104, %105 : vector<1x48xf32>
    %107 = vector.extract_strided_slice %100 {offsets = [0, 48], sizes = [1, 16], strides = [1, 1]} : vector<1x64xf32> to vector<1x16xf32>
    %108 = math.tanh %107 : vector<1x16xf32>
    %109 = vector.extract_strided_slice %106 {offsets = [0, 0], sizes = [1, 16], strides = [1, 1]} : vector<1x48xf32> to vector<1x16xf32>
    %110 = vector.extract_strided_slice %106 {offsets = [0, 16], sizes = [1, 16], strides = [1, 1]} : vector<1x48xf32> to vector<1x16xf32>
    %111 = vector.extract_strided_slice %106 {offsets = [0, 32], sizes = [1, 16], strides = [1, 1]} : vector<1x48xf32> to vector<1x16xf32>
    %112 = arith.mulf %110, %92 : vector<1x16xf32>
    %113 = arith.mulf %109, %108 : vector<1x16xf32>
    %114 = arith.addf %112, %113 : vector<1x16xf32>
    %115 = math.tanh %114 : vector<1x16xf32>
    %116 = arith.mulf %111, %115 : vector<1x16xf32>
    %117 = arith.index_cast %c4_i32 : i32 to index
    %c0_29 = arith.constant 0 : index
    %118 = vector.load %arg6[%117, %c0_29] : memref<8x16xf32, #tpu.memory_space<vmem>>, vector<1x16xf32>
    tpu.vector_store %arg6[%117, %c0_29], %116 {strides = array<i32>} : memref<8x16xf32, #tpu.memory_space<vmem>>, vector<1x16xf32>,
    %c5_i32 = arith.constant 5 : i32
    %119 = arith.index_cast %c5_i32 : i32 to index
    %c0_30 = arith.constant 0 : index
    %120 = vector.load %arg5[%119, %c0_30] : memref<8x64xf32, #tpu.memory_space<vmem>>, vector<1x64xf32>
    %cst_31 = arith.constant dense<0.000000e+00> : vector<1x64xf32>
    %121 = tpu.matmul %116, %7, %cst_31 {dimension_numbers = #tpu.dot_dimension_numbers<[1], [0], [0], [1], [0, 0, 1, 1], [], []>} : vector<1x16xf32>, vector<16x64xf32>, vector<1x64xf32> -> vector<1x64xf32>
    %122 = arith.addf %120, %121 : vector<1x64xf32>
    %123 = vector.extract_strided_slice %122 {offsets = [0, 0], sizes = [1, 48], strides = [1, 1]} : vector<1x64xf32> to vector<1x48xf32>
    %124 = arith.negf %123 : vector<1x48xf32>
    %125 = math.exp %124 : vector<1x48xf32>
    %cst_32 = arith.constant 1.000000e+00 : f32
    %126 = vector.broadcast %cst_32 : f32 to vector<1x48xf32>
    %127 = arith.addf %126, %125 : vector<1x48xf32>
    %128 = arith.divf %126, %127 : vector<1x48xf32>
    %129 = vector.extract_strided_slice %122 {offsets = [0, 48], sizes = [1, 16], strides = [1, 1]} : vector<1x64xf32> to vector<1x16xf32>
    %130 = math.tanh %129 : vector<1x16xf32>
    %131 = vector.extract_strided_slice %128 {offsets = [0, 0], sizes = [1, 16], strides = [1, 1]} : vector<1x48xf32> to vector<1x16xf32>
    %132 = vector.extract_strided_slice %128 {offsets = [0, 16], sizes = [1, 16], strides = [1, 1]} : vector<1x48xf32> to vector<1x16xf32>
    %133 = vector.extract_strided_slice %128 {offsets = [0, 32], sizes = [1, 16], strides = [1, 1]} : vector<1x48xf32> to vector<1x16xf32>
    %134 = arith.mulf %132, %114 : vector<1x16xf32>
    %135 = arith.mulf %131, %130 : vector<1x16xf32>
    %136 = arith.addf %134, %135 : vector<1x16xf32>
    %137 = math.tanh %136 : vector<1x16xf32>
    %138 = arith.mulf %133, %137 : vector<1x16xf32>
    %139 = arith.index_cast %c5_i32 : i32 to index
    %c0_33 = arith.constant 0 : index
    %140 = vector.load %arg6[%139, %c0_33] : memref<8x16xf32, #tpu.memory_space<vmem>>, vector<1x16xf32>
    tpu.vector_store %arg6[%139, %c0_33], %138 {strides = array<i32>} : memref<8x16xf32, #tpu.memory_space<vmem>>, vector<1x16xf32>,
    %c6_i32 = arith.constant 6 : i32
    %141 = arith.index_cast %c6_i32 : i32 to index
    %c0_34 = arith.constant 0 : index
    %142 = vector.load %arg5[%141, %c0_34] : memref<8x64xf32, #tpu.memory_space<vmem>>, vector<1x64xf32>
    %cst_35 = arith.constant dense<0.000000e+00> : vector<1x64xf32>
    %143 = tpu.matmul %138, %7, %cst_35 {dimension_numbers = #tpu.dot_dimension_numbers<[1], [0], [0], [1], [0, 0, 1, 1], [], []>} : vector<1x16xf32>, vector<16x64xf32>, vector<1x64xf32> -> vector<1x64xf32>
    %144 = arith.addf %142, %143 : vector<1x64xf32>
    %145 = vector.extract_strided_slice %144 {offsets = [0, 0], sizes = [1, 48], strides = [1, 1]} : vector<1x64xf32> to vector<1x48xf32>
    %146 = arith.negf %145 : vector<1x48xf32>
    %147 = math.exp %146 : vector<1x48xf32>
    %cst_36 = arith.constant 1.000000e+00 : f32
    %148 = vector.broadcast %cst_36 : f32 to vector<1x48xf32>
    %149 = arith.addf %148, %147 : vector<1x48xf32>
    %150 = arith.divf %148, %149 : vector<1x48xf32>
    %151 = vector.extract_strided_slice %144 {offsets = [0, 48], sizes = [1, 16], strides = [1, 1]} : vector<1x64xf32> to vector<1x16xf32>
    %152 = math.tanh %151 : vector<1x16xf32>
    %153 = vector.extract_strided_slice %150 {offsets = [0, 0], sizes = [1, 16], strides = [1, 1]} : vector<1x48xf32> to vector<1x16xf32>
    %154 = vector.extract_strided_slice %150 {offsets = [0, 16], sizes = [1, 16], strides = [1, 1]} : vector<1x48xf32> to vector<1x16xf32>
    %155 = vector.extract_strided_slice %150 {offsets = [0, 32], sizes = [1, 16], strides = [1, 1]} : vector<1x48xf32> to vector<1x16xf32>
    %156 = arith.mulf %154, %136 : vector<1x16xf32>
    %157 = arith.mulf %153, %152 : vector<1x16xf32>
    %158 = arith.addf %156, %157 : vector<1x16xf32>
    %159 = math.tanh %158 : vector<1x16xf32>
    %160 = arith.mulf %155, %159 : vector<1x16xf32>
    %161 = arith.index_cast %c6_i32 : i32 to index
    %c0_37 = arith.constant 0 : index
    %162 = vector.load %arg6[%161, %c0_37] : memref<8x16xf32, #tpu.memory_space<vmem>>, vector<1x16xf32>
    tpu.vector_store %arg6[%161, %c0_37], %160 {strides = array<i32>} : memref<8x16xf32, #tpu.memory_space<vmem>>, vector<1x16xf32>,
    %c7_i32 = arith.constant 7 : i32
    %163 = arith.index_cast %c7_i32 : i32 to index
    %c0_38 = arith.constant 0 : index
    %164 = vector.load %arg5[%163, %c0_38] : memref<8x64xf32, #tpu.memory_space<vmem>>, vector<1x64xf32>
    %cst_39 = arith.constant dense<0.000000e+00> : vector<1x64xf32>
    %165 = tpu.matmul %160, %7, %cst_39 {dimension_numbers = #tpu.dot_dimension_numbers<[1], [0], [0], [1], [0, 0, 1, 1], [], []>} : vector<1x16xf32>, vector<16x64xf32>, vector<1x64xf32> -> vector<1x64xf32>
    %166 = arith.addf %164, %165 : vector<1x64xf32>
    %167 = vector.extract_strided_slice %166 {offsets = [0, 0], sizes = [1, 48], strides = [1, 1]} : vector<1x64xf32> to vector<1x48xf32>
    %168 = arith.negf %167 : vector<1x48xf32>
    %169 = math.exp %168 : vector<1x48xf32>
    %cst_40 = arith.constant 1.000000e+00 : f32
    %170 = vector.broadcast %cst_40 : f32 to vector<1x48xf32>
    %171 = arith.addf %170, %169 : vector<1x48xf32>
    %172 = arith.divf %170, %171 : vector<1x48xf32>
    %173 = vector.extract_strided_slice %166 {offsets = [0, 48], sizes = [1, 16], strides = [1, 1]} : vector<1x64xf32> to vector<1x16xf32>
    %174 = math.tanh %173 : vector<1x16xf32>
    %175 = vector.extract_strided_slice %172 {offsets = [0, 0], sizes = [1, 16], strides = [1, 1]} : vector<1x48xf32> to vector<1x16xf32>
    %176 = vector.extract_strided_slice %172 {offsets = [0, 16], sizes = [1, 16], strides = [1, 1]} : vector<1x48xf32> to vector<1x16xf32>
    %177 = vector.extract_strided_slice %172 {offsets = [0, 32], sizes = [1, 16], strides = [1, 1]} : vector<1x48xf32> to vector<1x16xf32>
    %178 = arith.mulf %176, %158 : vector<1x16xf32>
    %179 = arith.mulf %175, %174 : vector<1x16xf32>
    %180 = arith.addf %178, %179 : vector<1x16xf32>
    %181 = math.tanh %180 : vector<1x16xf32>
    %182 = arith.mulf %177, %181 : vector<1x16xf32>
    %183 = arith.index_cast %c7_i32 : i32 to index
    %c0_41 = arith.constant 0 : index
    %184 = vector.load %arg6[%183, %c0_41] : memref<8x16xf32, #tpu.memory_space<vmem>>, vector<1x16xf32>
    tpu.vector_store %arg6[%183, %c0_41], %182 {strides = array<i32>} : memref<8x16xf32, #tpu.memory_space<vmem>>, vector<1x16xf32>,
    %c8_i32 = arith.constant 8 : i32
    %c0_42 = arith.constant 0 : index
    %c0_43 = arith.constant 0 : index
    %185 = vector.load %arg6[%c0_42, %c0_43] : memref<8x16xf32, #tpu.memory_space<vmem>>, vector<8x16xf32>
    %186 = vector.extract_strided_slice %185 {offsets = [0, 0], sizes = [8, 8], strides = [1, 1]} : vector<8x16xf32> to vector<8x8xf32>
    %187 = vector.extract_strided_slice %185 {offsets = [0, 8], sizes = [8, 8], strides = [1, 1]} : vector<8x16xf32> to vector<8x8xf32>
    %188 = arith.mulf %186, %187 : vector<8x8xf32>
    %cst_44 = arith.constant dense<0.000000e+00> : vector<8xf32>
    %189 = vector.multi_reduction <add>, %188, %cst_44 [1] : vector<8x8xf32> to vector<8xf32>
    %190 = vector.shape_cast %189 : vector<8xf32> to vector<8x1xf32>
    %c0_45 = arith.constant 0 : index
    %c0_46 = arith.constant 0 : index
    %191 = vector.load %arg4[%c0_45, %c0_46] : memref<8x1xf32, #tpu.memory_space<vmem>>, vector<8x1xf32>
    tpu.vector_store %arg4[%c0_45, %c0_46], %190 {strides = array<i32>} : memref<8x1xf32, #tpu.memory_space<vmem>>, vector<8x1xf32>,
    return
  }
}

</mosaic_0001>

<bundles_post_ra>
// kernel: tpu_custom_call.1
= control target key start
LH: loop header
LB: loop body
LE: loop exit
PB: predicated region body
PF: predicated region fallthrough
CT: control target
= control target key end

     0   :  { %9 = vsyncpa [#allocation5], 0  ;;  %s1459_s0 = inlined_call_operand.hbm [shape: f32[8,28], index: 0, kind: input, shape index: {}]   ;;  %s1460_s1 = inlined_call_operand.hbm [shape: f32[28,64], index: 1, kind: input, shape index: {}]   ;;  %s1461_s2 = inlined_call_operand.hbm [shape: f32[16,64], index: 2, kind: input, shape index: {}]   ;;  %s1462_s3 = inlined_call_operand.vmem [shape: f32[1,64], index: 3, kind: input, shape index: {}]   ;;  %s1463_s4 = inlined_call_operand.vmem [shape: f32[8,1], index: 4, kind: output, shape index: {}]  }
   0x1   :  { %10 = vsyncpa [#allocation7], 0  ;;  %s1287_s15 = smov [#allocation6]   ;;  %s1217_s19 = scalar_lea.hbm %s1460_s1, 512 }
   0x2   :  { %s26_s16 = sshll.u32 %s1287_s15, 4  ;;  %p1218_p0 = scmp.ne.s32.totalorder %s1460_s1, %s1217_s19  ;;  %s27_s16 = int_to_ptr.vmem [resolvable:$true] %s26_s16 }
   0x3   :  { %p1221_p1 = scmp.lt.u32.totalorder %s1217_s19, %s1460_s1 }
   0x5   :  { %p1223_p2 = pnand %p1221_p1, %p1218_p0 }
   0x7   :  { %1226 = shalt.err (!%p1223_p2)
}
   0x8   :  { %s1227_s24 = scalar_lea.vmem %s27_s16, 512  ;;  %p1232_p4 = scmp.lt.s32.totalorder %s27_s16, %s27_s16 }
   0x9   :  { %p1228_p3 = scmp.ne.s32.totalorder %s27_s16, %s1227_s24  ;;  %p1233_p5 = scmp.lt.s32.totalorder %s1227_s24, %s1227_s24 }
   0xb   :  { %p1234_p6 = por %p1233_p5, %p1232_p4 }
   0xd   :  { %p1235_p7 = pnand %p1234_p6, %p1228_p3 }
   0xf   :  { %1238 = shalt.err (!%p1235_p7)
}
  0x10   :  { %s1288_s25 = smov 128   ;;  %s1289_s26 = smov 8  }
  0x11   :  { %32 = dma.hbm_to_vmem [thread:$0]  %s1460_s1, 512, %s27_s16, [#allocation7], %s1288_s25, %s1288_s25, %s1289_s26  }
  0x12   :  { %s1290_s29 = smov [#allocation4]   ;;  %s1291_s5 = smov [#allocation8]  }
  0x13   :  { %s17_s30 = sshll.u32 %s1290_s29, 4  ;;  %s38_s6 = sshll.u32 %s1291_s5, 4  ;;  %s18_s30 = int_to_ptr.vmem [resolvable:$true] %s17_s30  ;;  %s39_s6 = int_to_ptr.vmem [resolvable:$true] %s38_s6 }
  0x14   :  { %s1239_s9 = scalar_lea.hbm %s1459_s0, 128 }
  0x15   :  { %p1240_p8 = scmp.ne.s32.totalorder %s1459_s0, %s1239_s9  ;;  %p1243_p9 = scmp.lt.u32.totalorder %s1239_s9, %s1459_s0 }
  0x17   :  { %p1245_p10 = pnand %p1243_p9, %p1240_p8 }
  0x19   :  { %1248 = shalt.err (!%p1245_p10)
}
  0x1a   :  { %s1249_s1 = scalar_lea.vmem %s18_s30, 128  ;;  %p1254_p12 = scmp.lt.s32.totalorder %s18_s30, %s18_s30 }
  0x1b   :  { %p1250_p11 = scmp.ne.s32.totalorder %s18_s30, %s1249_s1  ;;  %p1255_p13 = scmp.lt.s32.totalorder %s1249_s1, %s1249_s1 }
  0x1d   :  { %p1256_p0 = por %p1255_p13, %p1254_p12 }
  0x1f   :  { %p1257_p1 = pnand %p1256_p0, %p1250_p11 }
  0x21   :  { %1260 = shalt.err (!%p1257_p1)
}
  0x22   :  { %20 = dma.hbm_to_vmem [thread:$0]  %s1459_s0, 128, %s18_s30, [#allocation5]  }
  0x23   :  { %s1261_s18 = scalar_lea.hbm %s1461_s2, 256 }
  0x24   :  { %p1262_p2 = scmp.ne.s32.totalorder %s1461_s2, %s1261_s18  ;;  %p1265_p3 = scmp.lt.u32.totalorder %s1261_s18, %s1461_s2 }
  0x26   :  { %p1267_p4 = pnand %p1265_p3, %p1262_p2 }
  0x28   :  { %1270 = shalt.err (!%p1267_p4)
}
  0x29   :  { %s1271_s23 = scalar_lea.vmem %s39_s6, 256  ;;  %p1276_p6 = scmp.lt.s32.totalorder %s39_s6, %s39_s6 }
  0x2a   :  { %p1272_p5 = scmp.ne.s32.totalorder %s39_s6, %s1271_s23  ;;  %p1277_p7 = scmp.lt.s32.totalorder %s1271_s23, %s1271_s23 }
  0x2c   :  { %p1278_p8 = por %p1277_p7, %p1276_p6 }
  0x2e   :  { %p1279_p9 = pnand %p1278_p8, %p1272_p5 }
  0x30   :  { %1282 = shalt.err (!%p1279_p9)
}
  0x31   :  { %44 = dma.hbm_to_vmem [thread:$0]  %s1461_s2, 256, %s39_s6, [#allocation7], %s1288_s25, %s1288_s25, %s1289_s26  }
  0x32   :  { %1283 = dma.done.wait [#allocation5], 128  }
  0x33   :  { %1284 = vsyncadd [#allocation5], 4294967168 }
  0x34   :  { %1285 = dma.done.wait [#allocation7], 768  }
  0x35   :  { %1286 = vsyncadd [#allocation7], 4294966528  ;;  %v1292_v0 = vmov 0.0|0.0   ;;  %vm1293_vm0 = vmmov 0   ;;  %v1294_v1 = vmov 0.0   ;;  %v57_v2 = vld [vmem:[#allocation6] sm:$0xff] }
  0x36   :  { %1109 = vmatprep.subr.bf16.mxu0 %v1292_v0  ;;  %1116 = vmatprep.subr.bf16.mxu1 %v1292_v0  ;;  %v58_v3 = vld [vmem:[#allocation6 + $0x8] sm:$0xff]  ;;  %v59_v4 = vld [vmem:[#allocation6 + $0x10] sm:$0xff]  ;;  %v60_v6 = vld [vmem:[#allocation6 + $0x18] sm:$0xf]  ;;  %vm72_vm1 = vcmask 1043456   ;;  %vm1295_vm2 = vmmov 1  }
  0x37   :  { %1050 = vmatprep.mubr.msk.f32.mxu0 %vm1293_vm0, %v1294_v1  ;;  %1057 = vmatprep.mubr.msk.f32.mxu1 %vm1293_vm0, %v1294_v1  ;;  %v1110_v5 = vpack.c.bf16 %v58_v3, %v57_v2  ;;  %v148_v7 = vld [vmem:[#allocation8] sm:$0xff]  ;;  %v149_v8 = vld [vmem:[#allocation8 + $0x8] sm:$0xff]  ;;  %v1113_v9 = vpack.c.bf16 %v60_v6, %v59_v4  ;;  %vm1114_vm3 = vmpackc.low %vm72_vm1, %vm1295_vm2  ;;  %vm68_vm4 = vcmask 228352   ;;  %vm146_vm5 = vcmask 523264   ;;  %s1296_s26 = smov 80   ;;  %s1298_s27 = smov 96  }
  0x38   :  { %v1373_v10 = vpack.c.bf16 %v149_v8, %v148_v7  ;;  %v56_v11 = vld [vmem:[#allocation4] sm:$0xff]  ;;  %v995_v12 = vld [vmem:[%s1462_s3] ss:$0 sm:$0xff]  ;;  %s1297_s3 = smov 16   ;;  %vm254_vm6 = vcmask 122880   ;;  %vm151_vm7 = vcmask 130048  }
  0x39   :  { %1111 = vmatpush3.bf16.msra.mxu0 %v1110_v5  ;;  %s1299_s28 = smov 120   ;;  %vm983_vm8 = vcmask 64512   ;;  %vm987_vm9 = vcmask 7168  }
  0x3a   :  { %1112 = vmatprep.subr.bf16.mxu0 %v1292_v0  ;;  %1118 = vmatpush3.bf16.msra.mxu1 %v1373_v10 }
  0x3b   :  { %1119 = vmatprep.subr.bf16.mxu1 %v1292_v0 }
  0x3d   :  { %1115 = vmatpush3.bf16.msk.msra.mxu0 %vm1114_vm3, %v1113_v9  ;;  %1058 = vmatmul.mubr.f32.vlgmr.msra.gmra.mrb[0].mxu1 %v1294_v1 }
  0x3e   :  { %1122 = vmatprep.subr.bf16.mxu0 %v1292_v0  ;;  %1121 = vmatpush3.bf16.msra.mxu1 %v1373_v10 }
  0x3f   :  { %1064 = vmatprep.mubr.msk.f32.mxu1 %vm1293_vm0, %v1294_v1  ;;  %1125 = vmatprep.subr.bf16.mxu1 %v1292_v0 }
  0x40   :  { %1051 = vmatmul.mubr.msk.f32.vlgmr.msra.gmra.mrb[0].mxu0 %vm68_vm4, %v56_v11 }
  0x41   :  { %1124 = vmatpush3.bf16.msra.mxu0 %v1373_v10  ;;  %1071 = vmatprep.mubr.msk.f32.mxu0 %vm1293_vm0, %v1294_v1 }
  0x42   :  { %1128 = vmatprep.subr.bf16.mxu0 %v1292_v0 }
 0x110   :  { %v221_v13 = vpop.f32.mrb[0].mxu1 }
 0x111   :  { %v1059_v14 = vpop.f32.mrb[1].mxu1 }
 0x113   :  { %v142_v15 = vpop.f32.mrb[0].mxu0 }
 0x114   :  { %v143_v16 = vadd.f32 %v995_v12, %v142_v15  ;;  %v1052_v17 = vpop.f32.mrb[1].mxu0 }
 0x116   :  { %147 = vst.msk [vmem:[#allocation2] sm:$0xff] %vm146_vm5, %v143_v16 }
 0x11d   :  { %v150_v18 = vld [vmem:[#allocation2] sm:$0x1]  ;;  %v256_v34 = vld [vmem:[#allocation2 + $0x1] sm:$0x1]  ;;  %v359_v52 = vld [vmem:[#allocation2 + $0x2] sm:$0x1] }
 0x11e   :  { %v225_v19 = vadd.f32 %v221_v13, %v150_v18  ;;  %v462_v8 = vld [vmem:[#allocation2 + $0x3] sm:$0x1] }
 0x120   :  { %1153 = vtanh.f32 %v225_v19  ;;  %v998_v21 = vmul.f32 -1.442695, %v225_v19 }
 0x122   :  { %1155 = vpow2.f32 %v998_v21 }
 0x12a   :  { %v1154_v20 = vpop.eup %1153 }
 0x12b   :  { %235 = vrot.lane.b32.xlu0 %v1154_v20, %s1296_s26 }
 0x12c   :  { %v1156_v22 = vpop.eup %1155 }
 0x12d   :  { %v229_v23 = vadd.f32 1.0, %v1156_v22 }
 0x12f   :  { %1157 = vrcp.f32 %v229_v23 }
 0x139   :  { %v1158_v24 = vpop.eup %1157 }
 0x13a   :  { %v233_v27 = vmul.f32 0.0, %v1158_v24 }
 0x19d   :  { %v236_v25 = vpop.permute.xlu0 %235 }
 0x19e   :  { %v238_v26 = vmul.f32 %v1158_v24, %v236_v25 }
 0x1a0   :  { %240 = vrot.lane.b32.xlu0 %v238_v26, %s1297_s3  ;;  %v565_v26 = vld [vmem:[#allocation2 + $0x4] sm:$0x1] }
 0x212   :  { %v241_v28 = vpop.permute.xlu0 %240 }
 0x213   :  { %v243_v29 = vadd.f32 %v241_v28, %v233_v27 }
 0x215   :  { %1159 = vtanh.f32 %v243_v29 }
 0x21f   :  { %v1160_v30 = vpop.eup %1159 }
 0x220   :  { %246 = vrot.lane.b32.xlu1 %v1160_v30, %s1297_s3 }
 0x292   :  { %v247_v31 = vpop.permute.xlu1 %246 }
 0x293   :  { %v249_v32 = vmul.f32 %v1158_v24, %v247_v31 }
 0x295   :  { %251 = vrot.lane.b32.xlu1 %v249_v32, %s1298_s27 }
 0x307   :  { %v252_v33 = vpop.permute.xlu1 %251 }
 0x308   :  { %255 = vst.msk [vmem:[#allocation3] sm:$0x1] %vm254_vm6, %v252_v33  ;;  %1065 = vmatmul.mubr.msk.f32.vlgmr.msra.gmra.mrb[2].mxu1 %vm151_vm7, %v252_v33 }
 0x309   :  { %1127 = vmatpush3.bf16.msra.mxu1 %v1373_v10  ;;  %1078 = vmatprep.mubr.msk.f32.mxu1 %vm1293_vm0, %v1294_v1 }
 0x30a   :  { %1131 = vmatprep.subr.bf16.mxu1 %v1292_v0 }
 0x3db   :  { %v325_v35 = vpop.f32.mrb[2].mxu1 }
 0x3dc   :  { %v329_v36 = vadd.f32 %v325_v35, %v256_v34  ;;  %v1066_v37 = vpop.f32.mrb[3].mxu1 }
 0x3de   :  { %1161 = vtanh.f32 %v329_v36  ;;  %v1000_v39 = vmul.f32 -1.442695, %v329_v36 }
 0x3e0   :  { %1163 = vpow2.f32 %v1000_v39 }
 0x3e8   :  { %v1162_v38 = vpop.eup %1161 }
 0x3e9   :  { %339 = vrot.lane.b32.xlu0 %v1162_v38, %s1296_s26 }
 0x3ea   :  { %v1164_v40 = vpop.eup %1163 }
 0x3eb   :  { %v333_v41 = vadd.f32 1.0, %v1164_v40 }
 0x3ed   :  { %1165 = vrcp.f32 %v333_v41 }
 0x3f7   :  { %v1166_v42 = vpop.eup %1165 }
 0x3f8   :  { %v337_v45 = vmul.f32 %v1166_v42, %v243_v29 }
 0x45b   :  { %v340_v43 = vpop.permute.xlu0 %339 }
 0x45c   :  { %v342_v44 = vmul.f32 %v1166_v42, %v340_v43 }
 0x45e   :  { %344 = vrot.lane.b32.xlu1 %v342_v44, %s1297_s3  ;;  %v668_v44 = vld [vmem:[#allocation2 + $0x5] sm:$0x1] }
 0x4d0   :  { %v345_v46 = vpop.permute.xlu1 %344 }
 0x4d1   :  { %v347_v47 = vadd.f32 %v345_v46, %v337_v45 }
 0x4d3   :  { %1167 = vtanh.f32 %v347_v47 }
 0x4dd   :  { %v1168_v48 = vpop.eup %1167 }
 0x4de   :  { %350 = vrot.lane.b32.xlu0 %v1168_v48, %s1297_s3 }
 0x550   :  { %v351_v49 = vpop.permute.xlu0 %350 }
 0x551   :  { %v353_v50 = vmul.f32 %v1166_v42, %v351_v49 }
 0x553   :  { %355 = vrot.lane.b32.xlu1 %v353_v50, %s1298_s27 }
 0x5c5   :  { %v356_v51 = vpop.permute.xlu1 %355 }
 0x5c6   :  { %358 = vst.msk [vmem:[#allocation3 + $0x1] sm:$0x1] %vm254_vm6, %v356_v51  ;;  %1072 = vmatmul.mubr.msk.f32.vlgmr.msra.gmra.mrb[2].mxu0 %vm151_vm7, %v356_v51 }
 0x5c7   :  { %1130 = vmatpush3.bf16.msra.mxu0 %v1373_v10  ;;  %1085 = vmatprep.mubr.msk.f32.mxu0 %vm1293_vm0, %v1294_v1 }
 0x5c8   :  { %1134 = vmatprep.subr.bf16.mxu0 %v1292_v0 }
 0x699   :  { %v428_v53 = vpop.f32.mrb[2].mxu0 }
 0x69a   :  { %v432_v54 = vadd.f32 %v428_v53, %v359_v52  ;;  %v1073_v55 = vpop.f32.mrb[3].mxu0 }
 0x69c   :  { %1169 = vtanh.f32 %v432_v54  ;;  %v1002_v57 = vmul.f32 -1.442695, %v432_v54 }
 0x69e   :  { %1171 = vpow2.f32 %v1002_v57 }
 0x6a6   :  { %v1170_v56 = vpop.eup %1169 }
 0x6a7   :  { %442 = vrot.lane.b32.xlu0 %v1170_v56, %s1296_s26 }
 0x6a8   :  { %v1172_v58 = vpop.eup %1171 }
 0x6a9   :  { %v436_v59 = vadd.f32 1.0, %v1172_v58 }
 0x6ab   :  { %1173 = vrcp.f32 %v436_v59 }
 0x6b5   :  { %v1174_v60 = vpop.eup %1173 }
 0x6b6   :  { %v440_v63 = vmul.f32 %v1174_v60, %v347_v47 }
 0x719   :  { %v443_v61 = vpop.permute.xlu0 %442 }
 0x71a   :  { %v445_v62 = vmul.f32 %v1174_v60, %v443_v61 }
 0x71c   :  { %447 = vrot.lane.b32.xlu1 %v445_v62, %s1297_s3 }
 0x78e   :  { %v448_v2 = vpop.permute.xlu1 %447 }
 0x78f   :  { %v450_v3 = vadd.f32 %v448_v2, %v440_v63 }
 0x791   :  { %1175 = vtanh.f32 %v450_v3 }
 0x79b   :  { %v1176_v4 = vpop.eup %1175 }
 0x79c   :  { %453 = vrot.lane.b32.xlu0 %v1176_v4, %s1297_s3 }
 0x80e   :  { %v454_v5 = vpop.permute.xlu0 %453 }
 0x80f   :  { %v456_v6 = vmul.f32 %v1174_v60, %v454_v5  ;;  %v771_v60 = vld [vmem:[#allocation2 + $0x6] sm:$0x1] }
 0x811   :  { %458 = vrot.lane.b32.xlu1 %v456_v6, %s1298_s27 }
 0x883   :  { %v459_v7 = vpop.permute.xlu1 %458 }
 0x884   :  { %461 = vst.msk [vmem:[#allocation3 + $0x2] sm:$0x1] %vm254_vm6, %v459_v7  ;;  %1079 = vmatmul.mubr.msk.f32.vlgmr.msra.gmra.mrb[4].mxu1 %vm151_vm7, %v459_v7 }
 0x885   :  { %1133 = vmatpush3.bf16.msra.mxu1 %v1373_v10  ;;  %1092 = vmatprep.mubr.msk.f32.mxu1 %vm1293_vm0, %v1294_v1 }
 0x886   :  { %1137 = vmatprep.subr.bf16.mxu1 %v1292_v0 }
 0x957   :  { %v531_v9 = vpop.f32.mrb[4].mxu1 }
 0x958   :  { %v535_v11 = vadd.f32 %v531_v9, %v462_v8  ;;  %v1080_v12 = vpop.f32.mrb[5].mxu1 }
 0x95a   :  { %1177 = vtanh.f32 %v535_v11  ;;  %v1004_v14 = vmul.f32 -1.442695, %v535_v11 }
 0x95c   :  { %1179 = vpow2.f32 %v1004_v14 }
 0x964   :  { %v1178_v13 = vpop.eup %1177 }
 0x965   :  { %545 = vrot.lane.b32.xlu0 %v1178_v13, %s1296_s26 }
 0x966   :  { %v1180_v15 = vpop.eup %1179 }
 0x967   :  { %v539_v16 = vadd.f32 1.0, %v1180_v15 }
 0x969   :  { %1181 = vrcp.f32 %v539_v16 }
 0x973   :  { %v1182_v17 = vpop.eup %1181 }
 0x974   :  { %v543_v20 = vmul.f32 %v1182_v17, %v450_v3 }
 0x9d7   :  { %v546_v18 = vpop.permute.xlu0 %545 }
 0x9d8   :  { %v548_v19 = vmul.f32 %v1182_v17, %v546_v18 }
 0x9da   :  { %550 = vrot.lane.b32.xlu1 %v548_v19, %s1297_s3 }
 0xa4c   :  { %v551_v0 = vpop.permute.xlu1 %550 }
 0xa4d   :  { %v553_v21 = vadd.f32 %v551_v0, %v543_v20 }
 0xa4f   :  { %1183 = vtanh.f32 %v553_v21 }
 0xa59   :  { %v1184_v22 = vpop.eup %1183 }
 0xa5a   :  { %556 = vrot.lane.b32.xlu0 %v1184_v22, %s1297_s3 }
 0xacc   :  { %v557_v23 = vpop.permute.xlu0 %556 }
 0xacd   :  { %v559_v24 = vmul.f32 %v1182_v17, %v557_v23  ;;  %v874_v17 = vld [vmem:[#allocation2 + $0x7] sm:$0x1] }
 0xacf   :  { %561 = vrot.lane.b32.xlu1 %v559_v24, %s1298_s27 }
 0xb41   :  { %v562_v25 = vpop.permute.xlu1 %561 }
 0xb42   :  { %564 = vst.msk [vmem:[#allocation3 + $0x3] sm:$0x1] %vm254_vm6, %v562_v25  ;;  %1086 = vmatmul.mubr.msk.f32.vlgmr.msra.gmra.mrb[4].mxu0 %vm151_vm7, %v562_v25 }
 0xb43   :  { %1136 = vmatpush3.bf16.msra.mxu0 %v1373_v10  ;;  %1099 = vmatprep.mubr.msk.f32.mxu0 %vm1293_vm0, %v1294_v1 }
 0xc15   :  { %v634_v27 = vpop.f32.mrb[4].mxu0 }
 0xc16   :  { %v638_v28 = vadd.f32 %v634_v27, %v565_v26  ;;  %v1087_v29 = vpop.f32.mrb[5].mxu0 }
 0xc18   :  { %1185 = vtanh.f32 %v638_v28  ;;  %v1006_v31 = vmul.f32 -1.442695, %v638_v28 }
 0xc1a   :  { %1187 = vpow2.f32 %v1006_v31 }
 0xc22   :  { %v1186_v30 = vpop.eup %1185 }
 0xc23   :  { %648 = vrot.lane.b32.xlu0 %v1186_v30, %s1296_s26 }
 0xc24   :  { %v1188_v32 = vpop.eup %1187 }
 0xc25   :  { %v642_v33 = vadd.f32 1.0, %v1188_v32 }
 0xc27   :  { %1189 = vrcp.f32 %v642_v33 }
 0xc31   :  { %v1190_v34 = vpop.eup %1189 }
 0xc32   :  { %v646_v37 = vmul.f32 %v1190_v34, %v553_v21 }
 0xc95   :  { %v649_v35 = vpop.permute.xlu0 %648 }
 0xc96   :  { %v651_v36 = vmul.f32 %v1190_v34, %v649_v35 }
 0xc98   :  { %653 = vrot.lane.b32.xlu1 %v651_v36, %s1297_s3 }
 0xd0a   :  { %v654_v38 = vpop.permute.xlu1 %653 }
 0xd0b   :  { %v656_v39 = vadd.f32 %v654_v38, %v646_v37 }
 0xd0d   :  { %1191 = vtanh.f32 %v656_v39 }
 0xd17   :  { %v1192_v40 = vpop.eup %1191 }
 0xd18   :  { %659 = vrot.lane.b32.xlu0 %v1192_v40, %s1297_s3 }
 0xd8a   :  { %v660_v41 = vpop.permute.xlu0 %659 }
 0xd8b   :  { %v662_v42 = vmul.f32 %v1190_v34, %v660_v41 }
 0xd8d   :  { %664 = vrot.lane.b32.xlu1 %v662_v42, %s1298_s27 }
 0xdff   :  { %v665_v43 = vpop.permute.xlu1 %664 }
 0xe00   :  { %667 = vst.msk [vmem:[#allocation3 + $0x4] sm:$0x1] %vm254_vm6, %v665_v43  ;;  %1093 = vmatmul.mubr.msk.f32.vlgmr.msra.gmra.mrb[6].mxu1 %vm151_vm7, %v665_v43 }
 0xe01   :  { %1139 = vmatpush3.bf16.msra.mxu1 %v1373_v10  ;;  %1106 = vmatprep.mubr.msk.f32.mxu1 %vm1293_vm0, %v1294_v1 }
 0xed3   :  { %v737_v45 = vpop.f32.mrb[6].mxu1 }
 0xed4   :  { %v741_v46 = vadd.f32 %v737_v45, %v668_v44  ;;  %v1094_v47 = vpop.f32.mrb[7].mxu1 }
 0xed6   :  { %1193 = vtanh.f32 %v741_v46  ;;  %v1008_v49 = vmul.f32 -1.442695, %v741_v46 }
 0xed8   :  { %1195 = vpow2.f32 %v1008_v49 }
 0xee0   :  { %v1194_v48 = vpop.eup %1193 }
 0xee1   :  { %751 = vrot.lane.b32.xlu0 %v1194_v48, %s1296_s26 }
 0xee2   :  { %v1196_v50 = vpop.eup %1195 }
 0xee3   :  { %v745_v51 = vadd.f32 1.0, %v1196_v50 }
 0xee5   :  { %1197 = vrcp.f32 %v745_v51 }
 0xeef   :  { %v1198_v52 = vpop.eup %1197 }
 0xef0   :  { %v749_v10 = vmul.f32 %v1198_v52, %v656_v39 }
 0xf53   :  { %v752_v53 = vpop.permute.xlu0 %751 }
 0xf54   :  { %v754_v54 = vmul.f32 %v1198_v52, %v752_v53 }
 0xf56   :  { %756 = vrot.lane.b32.xlu1 %v754_v54, %s1297_s3 }
 0xfc8   :  { %v757_v1 = vpop.permute.xlu1 %756 }
 0xfc9   :  { %v759_v55 = vadd.f32 %v757_v1, %v749_v10 }
 0xfcb   :  { %1199 = vtanh.f32 %v759_v55 }
 0xfd5   :  { %v1200_v56 = vpop.eup %1199 }
 0xfd6   :  { %762 = vrot.lane.b32.xlu0 %v1200_v56, %s1297_s3 }
0x1048   :  { %v763_v57 = vpop.permute.xlu0 %762 }
0x1049   :  { %v765_v58 = vmul.f32 %v1198_v52, %v763_v57 }
0x104b   :  { %767 = vrot.lane.b32.xlu1 %v765_v58, %s1298_s27 }
0x10bd   :  { %v768_v59 = vpop.permute.xlu1 %767 }
0x10be   :  { %770 = vst.msk [vmem:[#allocation3 + $0x5] sm:$0x1] %vm254_vm6, %v768_v59  ;;  %1100 = vmatmul.mubr.msk.f32.vlgmr.msra.gmra.mrb[6].mxu0 %vm151_vm7, %v768_v59 }
0x1191   :  { %v840_v61 = vpop.f32.mrb[6].mxu0 }
0x1192   :  { %v844_v62 = vadd.f32 %v840_v61, %v771_v60  ;;  %v1101_v63 = vpop.f32.mrb[7].mxu0 }
0x1194   :  { %1201 = vtanh.f32 %v844_v62  ;;  %v1010_v3 = vmul.f32 -1.442695, %v844_v62 }
0x1196   :  { %1203 = vpow2.f32 %v1010_v3 }
0x119e   :  { %v1202_v2 = vpop.eup %1201 }
0x119f   :  { %854 = vrot.lane.b32.xlu0 %v1202_v2, %s1296_s26 }
0x11a0   :  { %v1204_v4 = vpop.eup %1203 }
0x11a1   :  { %v848_v5 = vadd.f32 1.0, %v1204_v4 }
0x11a3   :  { %1205 = vrcp.f32 %v848_v5 }
0x11ad   :  { %v1206_v6 = vpop.eup %1205 }
0x11ae   :  { %v852_v9 = vmul.f32 %v1206_v6, %v759_v55 }
0x1211   :  { %v855_v7 = vpop.permute.xlu0 %854 }
0x1212   :  { %v857_v8 = vmul.f32 %v1206_v6, %v855_v7 }
0x1214   :  { %859 = vrot.lane.b32.xlu1 %v857_v8, %s1297_s3 }
0x1286   :  { %v860_v11 = vpop.permute.xlu1 %859 }
0x1287   :  { %v862_v12 = vadd.f32 %v860_v11, %v852_v9 }
0x1289   :  { %1207 = vtanh.f32 %v862_v12 }
0x1293   :  { %v1208_v13 = vpop.eup %1207 }
0x1294   :  { %865 = vrot.lane.b32.xlu0 %v1208_v13, %s1297_s3 }
0x1306   :  { %v866_v14 = vpop.permute.xlu0 %865 }
0x1307   :  { %v868_v15 = vmul.f32 %v1206_v6, %v866_v14 }
0x1309   :  { %870 = vrot.lane.b32.xlu1 %v868_v15, %s1298_s27 }
0x137b   :  { %v871_v16 = vpop.permute.xlu1 %870 }
0x137c   :  { %873 = vst.msk [vmem:[#allocation3 + $0x6] sm:$0x1] %vm254_vm6, %v871_v16  ;;  %1107 = vmatmul.mubr.msk.f32.vlgmr.msra.gmra.mrb[8].mxu1 %vm151_vm7, %v871_v16 }
0x144f   :  { %v943_v18 = vpop.f32.mrb[8].mxu1 }
0x1450   :  { %v947_v19 = vadd.f32 %v943_v18, %v874_v17  ;;  %v1108_v20 = vpop.f32.mrb[9].mxu1 }
0x1452   :  { %1209 = vtanh.f32 %v947_v19  ;;  %v1012_v21 = vmul.f32 -1.442695, %v947_v19 }
0x1454   :  { %1211 = vpow2.f32 %v1012_v21 }
0x145c   :  { %v1210_v0 = vpop.eup %1209 }
0x145d   :  { %957 = vrot.lane.b32.xlu0 %v1210_v0, %s1296_s26 }
0x145e   :  { %v1212_v22 = vpop.eup %1211 }
0x145f   :  { %v951_v23 = vadd.f32 1.0, %v1212_v22 }
0x1461   :  { %1213 = vrcp.f32 %v951_v23 }
0x146b   :  { %v1214_v24 = vpop.eup %1213 }
0x146c   :  { %v955_v27 = vmul.f32 %v1214_v24, %v862_v12 }
0x14cf   :  { %v958_v25 = vpop.permute.xlu0 %957 }
0x14d0   :  { %v960_v26 = vmul.f32 %v1214_v24, %v958_v25 }
0x14d2   :  { %962 = vrot.lane.b32.xlu1 %v960_v26, %s1297_s3 }
0x1544   :  { %v963_v28 = vpop.permute.xlu1 %962 }
0x1545   :  { %v965_v29 = vadd.f32 %v963_v28, %v955_v27 }
0x1547   :  { %1215 = vtanh.f32 %v965_v29 }
0x1551   :  { %v1216_v30 = vpop.eup %1215 }
0x1552   :  { %968 = vrot.lane.b32.xlu0 %v1216_v30, %s1297_s3 }
0x15c4   :  { %v969_v31 = vpop.permute.xlu0 %968 }
0x15c5   :  { %v971_v32 = vmul.f32 %v1214_v24, %v969_v31 }
0x15c7   :  { %973 = vrot.lane.b32.xlu1 %v971_v32, %s1298_s27 }
0x1639   :  { %v974_v33 = vpop.permute.xlu1 %973 }
0x163a   :  { %976 = vst.msk [vmem:[#allocation3 + $0x7] sm:$0x1] %vm254_vm6, %v974_v33 }
0x1641   :  { %v977_v34 = vld [vmem:[#allocation3] sm:$0xff] }
0x1642   :  { %979 = vrot.lane.b32.xlu0 %v977_v34, %s1299_s28 }
0x16b4   :  { %v980_v35 = vpop.permute.xlu0 %979 }
0x16b5   :  { %v982_v36 = vmul.f32 %v980_v35, %v977_v34 }
0x16b7   :  { %v984_v37 = vsel %vm983_vm8, %v982_v36, 0.0 }
0x16b8   :  { %985 = vadd.xlane.f32.xlu1 %v984_v37 }
0x1745   :  { %v986_v38 = vpop.xlane.xlu1 %985 }
0x1746   :  { %988 = vst.msk [vmem:[%s1463_s4] sm:$0xff] %vm987_vm9, %v986_v38 }
0x1747   :  { %993 = vsyncpa [#allocation5], 1 }
0x1748   :  { %994 = vsyncpa [#allocation7], 1 }

</bundles_post_ra>
